<compile_context>
chip_gen: v7x
topology: tpu7x:2x2x1
jax: 0.10.0
libtpu: 0.0.40
codegen_flags: <defaults>
</compile_context>

<pallas_src>
import functools

import jax
import jax.numpy as jnp
from jax.experimental import pallas as pl
from jax.experimental.pallas import tpu as pltpu


def _round_up(x, m):
    return ((x + m - 1) // m) * m


# ----------------------------------------------------------------------------
# Pallas kernel: fused multi-level, (optionally) GT + pseudo-GT branches
# ----------------------------------------------------------------------------
def _disp_loss_kernel(*refs, num_levels, scales, max_disp, has_pseudo):
    """refs = (pred_0 .. pred_{K-1}, target, [pseudo], out_smem)

    Output layout (float32, SMEM, accumulated over the row-tile grid axis):
      no pseudo : [gt_count, gt_sum_0, ..., gt_sum_{K-1}]
      pseudo    : [gt_count, ps_count, gt_sum_0.., gt_sum_{K-1},
                   ps_sum_0, ..., ps_sum_{K-1}]
    """
    K = num_levels
    pred_refs = refs[:K]
    tgt_ref = refs[K]
    pseudo_ref = refs[K + 1] if has_pseudo else None
    o_ref = refs[-1]
    n_out = (2 + 2 * K) if has_pseudo else (1 + K)

    @pl.when(pl.program_id(0) == 0)
    def _init():
        for j in range(n_out):
            o_ref[j] = 0.0

    tgt = tgt_ref[...].astype(jnp.float32)
    gt_mask = jnp.logical_and(tgt > 0.001, tgt < max_disp)
    gt_m = gt_mask.astype(jnp.float32)
    o_ref[0] += jnp.sum(gt_m)

    if has_pseudo:
        pd = pseudo_ref[...].astype(jnp.float32)
        ps_mask = jnp.logical_and(
            jnp.logical_and(pd > 0.0, pd < max_disp),
            jnp.logical_not(gt_mask))
        ps_m = ps_mask.astype(jnp.float32)
        o_ref[1] += jnp.sum(ps_m)

    base = 2 if has_pseudo else 1
    for k in range(K):
        pred = pred_refs[k][...].astype(jnp.float32)
        if scales[k] != 1.0:
            pred = pred * scales[k]          # disparity rescale fused in-kernel
        d = pred - tgt
        ad = jnp.abs(d)
        elem = jnp.where(ad < 1.0, 0.5 * d * d, ad - 0.5)   # smooth_l1, beta=1
        o_ref[base + k] += jnp.sum(elem * gt_m)
        if has_pseudo:
            dp = pred - pd
            adp = jnp.abs(dp)
            elem_p = jnp.where(adp < 1.0, 0.5 * dp * dp, adp - 0.5)
            o_ref[base + K + k] += jnp.sum(elem_p * ps_m)


# ----------------------------------------------------------------------------
# Wrapper around pallas_call
# ----------------------------------------------------------------------------
def _multi_level_masked_smooth_l1(preds_full, target, max_disp, scales,
                                  pseudo_disp=None):
    """preds_full: list of K (B,H,W) arrays at target resolution (unscaled).
    Returns (gt_losses (K,), pseudo_losses (K,) or None)."""
    K = len(preds_full)
    has_pseudo = pseudo_disp is not None
    B, H, W = target.shape
    R = B * H

    flat = [p.reshape(R, W).astype(jnp.float32) for p in preds_full]
    flat.append(target.reshape(R, W).astype(jnp.float32))
    if has_pseudo:
        flat.append(pseudo_disp.reshape(R, W).astype(jnp.float32))
    n_stream = len(flat)

    # Row tile size: multiple of 8; keep (n_stream x 2 buffers x tile) <= ~8 MiB
    # so the kernel is portable to v5e (16 MiB scoped default) and v7x (64 MiB
    # physical VMEM) while still hitting large-tile HBM-roofline behaviour.
    budget_bytes = 8 * 1024 * 1024
    bytes_per_row = n_stream * 2 * W * 4
    tile_r = max(8, min(512, budget_bytes // max(bytes_per_row, 1)))
    tile_r = (tile_r // 8) * 8
    r_pad8 = _round_up(R, 8)
    tile_r = min(tile_r, r_pad8)
    r_pad = _round_up(R, tile_r)
    if r_pad != R:
        # Zero-padded rows fail both masks -> contribute nothing to sums/counts.
        flat = [jnp.pad(a, ((0, r_pad - R), (0, 0))) for a in flat]
    num_tiles = r_pad // tile_r

    n_out = (2 + 2 * K) if has_pseudo else (1 + K)
    row_spec = pl.BlockSpec((tile_r, W), lambda i: (i, 0))
    kernel = functools.partial(
        _disp_loss_kernel,
        num_levels=K,
        scales=tuple(float(s) for s in scales),
        max_disp=float(max_disp),
        has_pseudo=has_pseudo)

    elems = r_pad * W
    flops = (4 + 8 * K * (2 if has_pseudo else 1)) * elems
    bytes_accessed = n_stream * elems * 4

    # TODO(synk): on v7x, split the row axis across the 2 TensorCores with
    # per-core partial outputs (summed in JAX) for up to ~2x on this
    # memory-bound kernel; single-core accumulation kept here for portability.
    out = pl.pallas_call(
        kernel,
        out_shape=jax.ShapeDtypeStruct((n_out,), jnp.float32),
        grid=(num_tiles,),
        in_specs=[row_spec] * n_stream,
        out_specs=pl.BlockSpec(memory_space=pltpu.MemorySpace.SMEM),
        compiler_params=pltpu.CompilerParams(
            dimension_semantics=("arbitrary",),          # output accumulates
            vmem_limit_bytes=32 * 1024 * 1024),
        cost_estimate=pl.CostEstimate(
            flops=flops, transcendentals=0, bytes_accessed=bytes_accessed),
    )(*flat)

    if has_pseudo:
        gt_losses = out[2:2 + K] / out[0]
        ps_losses = out[2 + K:2 + 2 * K] / out[1]
        return gt_losses, ps_losses
    gt_losses = out[1:1 + K] / out[0]
    return gt_losses, None


# ----------------------------------------------------------------------------
# DispSmooth forward (JAX/Pallas port)
# ----------------------------------------------------------------------------
class DispSmoothPallas:

    def __init__(self, cfg, max_disp, weight=None):
        self.loss_weight = weight
        self.max_disp = float(max_disp)
        self.highest_only = cfg.get('highest_only', False)
        if self.highest_only:
            self.loss_weight = [1]
        self.pseudo_gt = cfg.get('pseudo_gt', False)

    def __call__(self, preds_dict, target, pseudo_disp=None):
        preds = None
        for name in preds_dict.keys():
            if 'preds' in name and 'pyramid' in name:
                preds = preds_dict[name]
        if self.pseudo_gt and pseudo_disp is None:
            raise ValueError('Pseudo ground truth could not be None when adopted')
        if not isinstance(preds, list):
            preds = [preds]
        if self.highest_only:
            preds = [preds[-1]]
        if len(preds) != len(self.loss_weight):
            raise ValueError('Len of the loss weight does match the preds')

        B, Ht, Wt = target.shape
        preds_full, scales = [], []
        for pred_disp in preds:
            if pred_disp.shape[-1] != Wt:
                scale = Wt / pred_disp.shape[-1]
                # Bilinear upsample (align_corners=False semantics). The `*scale`
                # disparity rescale is folded into the Pallas kernel.
                # TODO(synk): fuse the bilinear upsample itself into the kernel
                # (index_map into the coarse map) to drop this extra HBM pass.
                pred_disp = jax.image.resize(
                    pred_disp, (B, Ht, Wt), method='bilinear')
            else:
                scale = 1.0
            preds_full.append(pred_disp)
            scales.append(scale)

        gt_losses, ps_losses = _multi_level_masked_smooth_l1(
            preds_full, target, self.max_disp, scales,
            pseudo_disp if self.pseudo_gt else None)

        disp_loss = 0.0
        pseudo_disp_loss = 0.0
        pyramid_loss = []
        pseudo_pyramid_loss = []
        for k in range(len(preds_full)):
            weight = self.loss_weight[k]
            curr_loss = gt_losses[k]
            disp_loss = disp_loss + weight * curr_loss
            pyramid_loss.append(curr_loss)
            if self.pseudo_gt:
                pseudo_curr_loss = ps_losses[k]
                pseudo_disp_loss = pseudo_disp_loss + weight * pseudo_curr_loss
                pseudo_pyramid_loss.append(pseudo_curr_loss)

        total_loss = disp_loss + pseudo_disp_loss
        return {
            'total_loss': total_loss,
            'multi_preds_loss': disp_loss,
            'multi_preds_pyramid': pyramid_loss,
            'pseudo_preds_loss': pseudo_disp_loss,
            'pseudo_preds_pyramid': pseudo_pyramid_loss,
        }


# ----------------------------------------------------------------------------
# Pure-JAX reference (mirrors the PyTorch module) for a sanity check
# ----------------------------------------------------------------------------
def _reference_total(preds, target, max_disp, weights, pseudo_disp=None):
    B, Ht, Wt = target.shape
    mask = (target > 0.001) & (target < max_disp)
    if pseudo_disp is not None:
        pmask = (pseudo_disp > 0) & (pseudo_disp < max_disp) & (~mask)

    def sl1(d):
        ad = jnp.abs(d)
        return jnp.where(ad < 1.0, 0.5 * d * d, ad - 0.5)

    disp_loss, pseudo_loss = 0.0, 0.0
    for k, p in enumerate(preds):
        if p.shape[-1] != Wt:
            scale = Wt / p.shape[-1]
            p = jax.image.resize(p, (B, Ht, Wt), method='bilinear') * scale
        e = sl1(p - target)
        disp_loss = disp_loss + weights[k] * (
            jnp.sum(jnp.where(mask, e, 0.0)) / jnp.sum(mask))
        if pseudo_disp is not None:
            ep = sl1(p - pseudo_disp)
            pseudo_loss = pseudo_loss + weights[k] * (
                jnp.sum(jnp.where(pmask, ep, 0.0)) / jnp.sum(pmask))
    return disp_loss + pseudo_loss


# ----------------------------------------------------------------------------
# Demo
# ----------------------------------------------------------------------------
if __name__ == "__main__":
    key = jax.random.PRNGKey(0)
    B, H, W = 2, 16, 16
    max_disp = 64.0

    k_t, k_p0, k_p1, k_p2, k_ps = jax.random.split(key, 5)
    target = jax.random.uniform(k_t, (B, H, W), jnp.float32, 0.0, 80.0)
    pseudo_disp = jax.random.uniform(k_ps, (B, H, W), jnp.float32, 0.0, 80.0)

    preds_pyramid = [
        jax.random.uniform(k_p0, (B, H // 4, W // 4), jnp.float32, 0.0, max_disp),
        jax.random.uniform(k_p1, (B, H // 2, W // 2), jnp.float32, 0.0, max_disp),
        jax.random.uniform(k_p2, (B, H, W), jnp.float32, 0.0, max_disp),
    ]
    preds_dict = {'preds_pyramid': preds_pyramid}
    loss_weight = [1.0 / 3.0, 2.0 / 3.0, 1.0]

    # --- GT-only branch ---
    loss_mod = DispSmoothPallas({'highest_only': False, 'pseudo_gt': False},
                                max_disp, weight=loss_weight)
    out = loss_mod(preds_dict, target)
    jax.block_until_ready(out['total_loss'])
    ref = _reference_total(preds_pyramid, target, max_disp, loss_weight)
    assert jnp.allclose(out['total_loss'], ref, rtol=1e-3, atol=1e-3), \
        (out['total_loss'], ref)

    # --- GT + pseudo-GT branch (fused kernel path) ---
    loss_mod_ps = DispSmoothPallas({'highest_only': False, 'pseudo_gt': True},
                                   max_disp, weight=loss_weight)
    out_ps = loss_mod_ps(preds_dict, target, pseudo_disp=pseudo_disp)
    jax.block_until_ready(out_ps['total_loss'])
    ref_ps = _reference_total(preds_pyramid, target, max_disp, loss_weight,
                              pseudo_disp=pseudo_disp)
    assert jnp.allclose(out_ps['total_loss'], ref_ps, rtol=1e-3, atol=1e-3), \
        (out_ps['total_loss'], ref_ps)

    print("KERNEL_OK")
</pallas_src>

<mosaic_0001>
module attributes {stable_mosaic.version = 11 : i64} {
  func.func @_disp_loss_kernel(%arg0: i32, %arg1: memref<32x16xf32, #tpu.memory_space<vmem>>, %arg2: memref<32x16xf32, #tpu.memory_space<vmem>>, %arg3: memref<32x16xf32, #tpu.memory_space<vmem>>, %arg4: memref<32x16xf32, #tpu.memory_space<vmem>>, %arg5: memref<4xf32, #tpu.memory_space<smem>>) attributes {dimension_semantics = [#tpu.dimension_semantics<arbitrary>], iteration_bounds = array<i64: 1>, scalar_prefetch = 0 : i64, scratch_operands = 0 : i64, tpu.core_type = #tpu.core_type<tc>, window_params = [{transform_indices = @transform_0, window_bounds = array<i64: 32, 16>}, {transform_indices = @transform_1, window_bounds = array<i64: 32, 16>}, {transform_indices = @transform_2, window_bounds = array<i64: 32, 16>}, {transform_indices = @transform_3, window_bounds = array<i64: 32, 16>}, {transform_indices = @transform_4, window_bounds = array<i64: 4>}]} {
    %c0_i32 = arith.constant 0 : i32
    %0 = arith.cmpi eq, %arg0, %c0_i32 : i32
    %1 = arith.extui %0 : i1 to i32
    %c0_i32_0 = arith.constant 0 : i32
    %2 = arith.cmpi ne, %1, %c0_i32_0 : i32
    scf.if %2 {
      %cst_29 = arith.constant 0.000000e+00 : f32
      %c0_30 = arith.constant 0 : index
      %79 = memref.load %arg5[%c0_30] : memref<4xf32, #tpu.memory_space<smem>>
      memref.store %cst_29, %arg5[%c0_30] : memref<4xf32, #tpu.memory_space<smem>>
      %cst_31 = arith.constant 0.000000e+00 : f32
      %c1_32 = arith.constant 1 : index
      %80 = memref.load %arg5[%c1_32] : memref<4xf32, #tpu.memory_space<smem>>
      memref.store %cst_31, %arg5[%c1_32] : memref<4xf32, #tpu.memory_space<smem>>
      %cst_33 = arith.constant 0.000000e+00 : f32
      %c2_34 = arith.constant 2 : index
      %81 = memref.load %arg5[%c2_34] : memref<4xf32, #tpu.memory_space<smem>>
      memref.store %cst_33, %arg5[%c2_34] : memref<4xf32, #tpu.memory_space<smem>>
      %cst_35 = arith.constant 0.000000e+00 : f32
      %c3_36 = arith.constant 3 : index
      %82 = memref.load %arg5[%c3_36] : memref<4xf32, #tpu.memory_space<smem>>
      memref.store %cst_35, %arg5[%c3_36] : memref<4xf32, #tpu.memory_space<smem>>
    } else {
    }
    %c0 = arith.constant 0 : index
    %c0_1 = arith.constant 0 : index
    %3 = vector.load %arg4[%c0, %c0_1] : memref<32x16xf32, #tpu.memory_space<vmem>>, vector<32x16xf32>
    %cst = arith.constant 1.000000e-03 : f32
    %4 = vector.broadcast %cst : f32 to vector<32x16xf32>
    %5 = arith.cmpf ogt, %3, %4 : vector<32x16xf32>
    %cst_2 = arith.constant 6.400000e+01 : f32
    %6 = vector.broadcast %cst_2 : f32 to vector<32x16xf32>
    %7 = arith.cmpf olt, %3, %6 : vector<32x16xf32>
    %8 = arith.andi %5, %7 : vector<32x16xi1>
    %9 = arith.extui %8 : vector<32x16xi1> to vector<32x16xi32>
    %10 = arith.sitofp %9 : vector<32x16xi32> to vector<32x16xf32>
    %c0_3 = arith.constant 0 : index
    %11 = memref.load %arg5[%c0_3] : memref<4xf32, #tpu.memory_space<smem>>
    %12 = vector.shape_cast %10 : vector<32x16xf32> to vector<1x32x16xf32>
    %cst_4 = arith.constant dense<0.000000e+00> : vector<1xf32>
    %13 = vector.multi_reduction <add>, %12, %cst_4 [1, 2] : vector<1x32x16xf32> to vector<1xf32>
    %14 = vector.shape_cast %13 : vector<1xf32> to vector<1x1x1xf32>
    %15 = vector.extract %14[0, 0, 0] : f32 from vector<1x1x1xf32>
    %16 = arith.addf %11, %15 : f32
    %c0_5 = arith.constant 0 : index
    %17 = memref.load %arg5[%c0_5] : memref<4xf32, #tpu.memory_space<smem>>
    memref.store %16, %arg5[%c0_5] : memref<4xf32, #tpu.memory_space<smem>>
    %c0_6 = arith.constant 0 : index
    %c0_7 = arith.constant 0 : index
    %18 = vector.load %arg1[%c0_6, %c0_7] : memref<32x16xf32, #tpu.memory_space<vmem>>, vector<32x16xf32>
    %cst_8 = arith.constant 4.000000e+00 : f32
    %19 = vector.broadcast %cst_8 : f32 to vector<32x16xf32>
    %20 = arith.mulf %18, %19 : vector<32x16xf32>
    %21 = arith.subf %20, %3 : vector<32x16xf32>
    %22 = math.absf %21 : vector<32x16xf32>
    %cst_9 = arith.constant 1.000000e+00 : f32
    %23 = vector.broadcast %cst_9 : f32 to vector<32x16xf32>
    %24 = arith.cmpf olt, %22, %23 : vector<32x16xf32>
    %cst_10 = arith.constant 5.000000e-01 : f32
    %25 = vector.broadcast %cst_10 : f32 to vector<32x16xf32>
    %26 = arith.mulf %25, %21 : vector<32x16xf32>
    %27 = arith.mulf %26, %21 : vector<32x16xf32>
    %cst_11 = arith.constant 5.000000e-01 : f32
    %28 = vector.broadcast %cst_11 : f32 to vector<32x16xf32>
    %29 = arith.subf %22, %28 : vector<32x16xf32>
    %30 = arith.select %24, %27, %29 : vector<32x16xi1>, vector<32x16xf32>
    %c1 = arith.constant 1 : index
    %31 = memref.load %arg5[%c1] : memref<4xf32, #tpu.memory_space<smem>>
    %32 = arith.mulf %30, %10 : vector<32x16xf32>
    %33 = vector.shape_cast %32 : vector<32x16xf32> to vector<1x32x16xf32>
    %cst_12 = arith.constant dense<0.000000e+00> : vector<1xf32>
    %34 = vector.multi_reduction <add>, %33, %cst_12 [1, 2] : vector<1x32x16xf32> to vector<1xf32>
    %35 = vector.shape_cast %34 : vector<1xf32> to vector<1x1x1xf32>
    %36 = vector.extract %35[0, 0, 0] : f32 from vector<1x1x1xf32>
    %37 = arith.addf %31, %36 : f32
    %c1_13 = arith.constant 1 : index
    %38 = memref.load %arg5[%c1_13] : memref<4xf32, #tpu.memory_space<smem>>
    memref.store %37, %arg5[%c1_13] : memref<4xf32, #tpu.memory_space<smem>>
    %c0_14 = arith.constant 0 : index
    %c0_15 = arith.constant 0 : index
    %39 = vector.load %arg2[%c0_14, %c0_15] : memref<32x16xf32, #tpu.memory_space<vmem>>, vector<32x16xf32>
    %cst_16 = arith.constant 2.000000e+00 : f32
    %40 = vector.broadcast %cst_16 : f32 to vector<32x16xf32>
    %41 = arith.mulf %39, %40 : vector<32x16xf32>
    %42 = arith.subf %41, %3 : vector<32x16xf32>
    %43 = math.absf %42 : vector<32x16xf32>
    %cst_17 = arith.constant 1.000000e+00 : f32
    %44 = vector.broadcast %cst_17 : f32 to vector<32x16xf32>
    %45 = arith.cmpf olt, %43, %44 : vector<32x16xf32>
    %cst_18 = arith.constant 5.000000e-01 : f32
    %46 = vector.broadcast %cst_18 : f32 to vector<32x16xf32>
    %47 = arith.mulf %46, %42 : vector<32x16xf32>
    %48 = arith.mulf %47, %42 : vector<32x16xf32>
    %cst_19 = arith.constant 5.000000e-01 : f32
    %49 = vector.broadcast %cst_19 : f32 to vector<32x16xf32>
    %50 = arith.subf %43, %49 : vector<32x16xf32>
    %51 = arith.select %45, %48, %50 : vector<32x16xi1>, vector<32x16xf32>
    %c2 = arith.constant 2 : index
    %52 = memref.load %arg5[%c2] : memref<4xf32, #tpu.memory_space<smem>>
    %53 = arith.mulf %51, %10 : vector<32x16xf32>
    %54 = vector.shape_cast %53 : vector<32x16xf32> to vector<1x32x16xf32>
    %cst_20 = arith.constant dense<0.000000e+00> : vector<1xf32>
    %55 = vector.multi_reduction <add>, %54, %cst_20 [1, 2] : vector<1x32x16xf32> to vector<1xf32>
    %56 = vector.shape_cast %55 : vector<1xf32> to vector<1x1x1xf32>
    %57 = vector.extract %56[0, 0, 0] : f32 from vector<1x1x1xf32>
    %58 = arith.addf %52, %57 : f32
    %c2_21 = arith.constant 2 : index
    %59 = memref.load %arg5[%c2_21] : memref<4xf32, #tpu.memory_space<smem>>
    memref.store %58, %arg5[%c2_21] : memref<4xf32, #tpu.memory_space<smem>>
    %c0_22 = arith.constant 0 : index
    %c0_23 = arith.constant 0 : index
    %60 = vector.load %arg3[%c0_22, %c0_23] : memref<32x16xf32, #tpu.memory_space<vmem>>, vector<32x16xf32>
    %61 = arith.subf %60, %3 : vector<32x16xf32>
    %62 = math.absf %61 : vector<32x16xf32>
    %cst_24 = arith.constant 1.000000e+00 : f32
    %63 = vector.broadcast %cst_24 : f32 to vector<32x16xf32>
    %64 = arith.cmpf olt, %62, %63 : vector<32x16xf32>
    %cst_25 = arith.constant 5.000000e-01 : f32
    %65 = vector.broadcast %cst_25 : f32 to vector<32x16xf32>
    %66 = arith.mulf %65, %61 : vector<32x16xf32>
    %67 = arith.mulf %66, %61 : vector<32x16xf32>
    %cst_26 = arith.constant 5.000000e-01 : f32
    %68 = vector.broadcast %cst_26 : f32 to vector<32x16xf32>
    %69 = arith.subf %62, %68 : vector<32x16xf32>
    %70 = arith.select %64, %67, %69 : vector<32x16xi1>, vector<32x16xf32>
    %c3 = arith.constant 3 : index
    %71 = memref.load %arg5[%c3] : memref<4xf32, #tpu.memory_space<smem>>
    %72 = arith.mulf %70, %10 : vector<32x16xf32>
    %73 = vector.shape_cast %72 : vector<32x16xf32> to vector<1x32x16xf32>
    %cst_27 = arith.constant dense<0.000000e+00> : vector<1xf32>
    %74 = vector.multi_reduction <add>, %73, %cst_27 [1, 2] : vector<1x32x16xf32> to vector<1xf32>
    %75 = vector.shape_cast %74 : vector<1xf32> to vector<1x1x1xf32>
    %76 = vector.extract %75[0, 0, 0] : f32 from vector<1x1x1xf32>
    %77 = arith.addf %71, %76 : f32
    %c3_28 = arith.constant 3 : index
    %78 = memref.load %arg5[%c3_28] : memref<4xf32, #tpu.memory_space<smem>>
    memref.store %77, %arg5[%c3_28] : memref<4xf32, #tpu.memory_space<smem>>
    return
  }
  func.func @transform_0(%arg0: i32) -> (i32, i32) {
    %c0_i32 = arith.constant 0 : i32
    %c0_i32_0 = arith.constant 0 : i32
    return %arg0, %c0_i32 : i32, i32
  }
  func.func @transform_1(%arg0: i32) -> (i32, i32) {
    %c0_i32 = arith.constant 0 : i32
    %c0_i32_0 = arith.constant 0 : i32
    return %arg0, %c0_i32 : i32, i32
  }
  func.func @transform_2(%arg0: i32) -> (i32, i32) {
    %c0_i32 = arith.constant 0 : i32
    %c0_i32_0 = arith.constant 0 : i32
    return %arg0, %c0_i32 : i32, i32
  }
  func.func @transform_3(%arg0: i32) -> (i32, i32) {
    %c0_i32 = arith.constant 0 : i32
    %c0_i32_0 = arith.constant 0 : i32
    return %arg0, %c0_i32 : i32, i32
  }
  func.func @transform_4(%arg0: i32) -> i32 {
    %c0_i32 = arith.constant 0 : i32
    %c0_i32_0 = arith.constant 0 : i32
    return %c0_i32 : i32
  }
}

</mosaic_0001>

<bundles_post_ra>
// kernel: tpu_custom_call.1
= control target key start
LH: loop header
LB: loop body
LE: loop exit
PB: predicated region body
PF: predicated region fallthrough
CT: control target
= control target key end

     0   :  { %vm55_vm0 = vcmask 130048   ;;  %v306_v4 = vmov 0.0   ;;  %s540_s0 = inlined_call_operand.vmem [shape: f32[32,16], index: 0, kind: input, shape index: {}]   ;;  %s541_s1 = inlined_call_operand.vmem [shape: f32[32,16], index: 1, kind: input, shape index: {}]   ;;  %s542_s2 = inlined_call_operand.vmem [shape: f32[32,16], index: 2, kind: input, shape index: {}]   ;;  %s543_s3 = inlined_call_operand.vmem [shape: f32[32,16], index: 3, kind: input, shape index: {}]   ;;  %s544_s4 = inlined_call_operand.hbm [shape: f32[4], index: 4, kind: output, shape index: {}]  }
   0x1   :  { %v336_v0 = vld [vmem:[%s543_s3] sm:$0xff]  ;;  %v341_v1 = vld [vmem:[%s543_s3 + $0x8] sm:$0xff]  ;;  %v346_v2 = vld [vmem:[%s543_s3 + $0x10] sm:$0xff] }
   0x2   :  { %v351_v3 = vld [vmem:[%s543_s3 + $0x18] sm:$0xff]  ;;  %vm34_vm1 = vcmp.gt.f32.partialorder %v336_v0, 0.001  ;;  %vm35_vm2 = vcmp.gt.f32.partialorder %v341_v1, 0.001  ;;  %vm38_vm3 = vcmp.lt.f32.partialorder %v336_v0, 64.0 }
   0x3   :  { %vm36_vm4 = vcmp.gt.f32.partialorder %v346_v2, 0.001  ;;  %vm37_vm5 = vcmp.gt.f32.partialorder %v351_v3, 0.001  ;;  %vm39_vm6 = vcmp.lt.f32.partialorder %v341_v1, 64.0  ;;  %vm40_vm7 = vcmp.lt.f32.partialorder %v346_v2, 64.0  ;;  %vm42_vm8 = vmand %vm34_vm1, %vm38_vm3 }
   0x4   :  { %vm41_vm9 = vcmp.lt.f32.partialorder %v351_v3, 64.0  ;;  %vm43_vm10 = vmand %vm35_vm2, %vm39_vm6  ;;  %v361_v5 = vsel %vm42_vm8, 1.0, %v306_v4  ;;  %v135_v6 = vld [vmem:[%s541_s1] sm:$0xff]  ;;  %v136_v7 = vld [vmem:[%s541_s1 + $0x8] sm:$0xff] }
   0x5   :  { %vm44_vm11 = vmand %vm36_vm4, %vm40_vm7  ;;  %v369_v8 = vsel %vm43_vm10, 1.0, %v306_v4  ;;  %v56_v9 = vsel %vm55_vm0, %v361_v5, 0.0  ;;  %v137_v10 = vld [vmem:[%s541_s1 + $0x10] sm:$0xff]  ;;  %v138_v11 = vld [vmem:[%s541_s1 + $0x18] sm:$0xff]  ;;  %v139_v12 = vmul.f32 2.0, %v135_v6  ;;  %v140_v13 = vmul.f32 2.0, %v136_v7 }
   0x6   :  { %vm45_vm12 = vmand %vm37_vm5, %vm41_vm9  ;;  %v381_v14 = vsel %vm44_vm11, 1.0, %v306_v4  ;;  %v57_v15 = vsel %vm55_vm0, %v369_v8, 0.0  ;;  %v141_v16 = vmul.f32 2.0, %v137_v10  ;;  %v142_v17 = vmul.f32 2.0, %v138_v11  ;;  %v75_v18 = vld [vmem:[%s540_s0] sm:$0xff] }
   0x7   :  { %v388_v19 = vsel %vm45_vm12, 1.0, %v306_v4  ;;  %v58_v20 = vadd.f32 %v57_v15, %v56_v9  ;;  %v59_v21 = vsel %vm55_vm0, %v381_v14, 0.0  ;;  %v143_v22 = vsub.f32 %v139_v12, %v336_v0  ;;  %v195_v23 = vld [vmem:[%s542_s2] sm:$0xff] }
   0x8   :  { %v61_v24 = vsel %vm55_vm0, %v388_v19, 0.0  ;;  %v144_v25 = vsub.f32 %v140_v13, %v341_v1  ;;  %v145_v26 = vsub.f32 %v141_v16, %v346_v2  ;;  %v146_v27 = vsub.f32 %v142_v17, %v351_v3 }
   0x9   :  { %v60_v28 = vadd.f32 %v59_v21, %v58_v20  ;;  %v147_v29 = vand.u32 2147483647, %v143_v22  ;;  %v155_v30 = vmul.f32 0.5, %v143_v22  ;;  %v79_v31 = vmul.f32 4.0, %v75_v18 }
   0xa   :  { %9 = vsyncpa [#allocation3], 0  ;;  %v148_v32 = vand.u32 2147483647, %v144_v25  ;;  %v149_v33 = vand.u32 2147483647, %v145_v26  ;;  %v402_v35 = vsub.f32 %v195_v23, %v336_v0 }
   0xb   :  { %v150_v34 = vand.u32 2147483647, %v146_v27  ;;  %v62_v36 = vadd.f32 %v61_v24, %v60_v28  ;;  %vm404_vm13 = vcmp.lt.f32.partialorder %v147_v29, 1.0  ;;  %v156_v38 = vmul.f32 0.5, %v144_v25  ;;  %v76_v40 = vld [vmem:[%s540_s0 + $0x8] sm:$0xff]  ;;  %v77_v45 = vld [vmem:[%s540_s0 + $0x10] sm:$0xff] }
   0xc   :  { %v157_v39 = vmul.f32 0.5, %v145_v26  ;;  %vm411_vm14 = vcmp.lt.f32.partialorder %v148_v32, 1.0  ;;  %vm415_vm15 = vcmp.lt.f32.partialorder %v149_v33, 1.0  ;;  %v158_v44 = vmul.f32 0.5, %v146_v27  ;;  %v78_v46 = vld [vmem:[%s540_s0 + $0x18] sm:$0xff]  ;;  %s294_s3 = scalar_lea.hbm %s544_s4, 16 }
   0xd   :  { %vm419_vm1 = vcmp.lt.f32.partialorder %v150_v34, 1.0  ;;  %63 = vadd.xlane.f32.xlu0 %v62_v36  ;;  %v159_v47 = vmul.f32 %v155_v30, %v143_v22  ;;  %v160_v48 = vmul.f32 %v156_v38, %v144_v25  ;;  %v273_v50 = vadd.f32 -0.5, %v147_v29  ;;  %v196_v30 = vld [vmem:[%s542_s2 + $0x8] sm:$0xff]  ;;  %v198_v37 = vld [vmem:[%s542_s2 + $0x18] sm:$0xff]  ;;  %p295_p0 = scmp.ne.s32.totalorder %s544_s4, %s294_s3  ;;  %p298_p1 = scmp.lt.u32.totalorder %s294_s3, %s544_s4 }
   0xe   :  { %v161_v49 = vmul.f32 %v157_v39, %v145_v26  ;;  %v162_v51 = vmul.f32 %v158_v44, %v146_v27  ;;  %v274_v52 = vadd.f32 -0.5, %v148_v32  ;;  %v275_v53 = vadd.f32 -0.5, %v149_v33 }
   0xf   :  { %v276_v54 = vadd.f32 -0.5, %v150_v34  ;;  %v167_v55 = vsel %vm404_vm13, %v159_v47, %v273_v50  ;;  %v80_v56 = vmul.f32 4.0, %v76_v40  ;;  %v81_v57 = vmul.f32 4.0, %v77_v45  ;;  %p300_p2 = pnand %p298_p1, %p295_p0 }
  0x10   :  { %v82_v58 = vmul.f32 4.0, %v78_v46  ;;  %v168_v59 = vsel %vm411_vm14, %v160_v48, %v274_v52  ;;  %v169_v60 = vsel %vm415_vm15, %v161_v49, %v275_v53  ;;  %v172_v62 = vmul.f32 %v361_v5, %v167_v55 }
  0x11   :  { %v170_v61 = vsel %vm419_vm1, %v162_v51, %v276_v54  ;;  %v173_v63 = vmul.f32 %v369_v8, %v168_v59  ;;  %v174_v4 = vmul.f32 %v381_v14, %v169_v60  ;;  %v83_v7 = vsub.f32 %v79_v31, %v336_v0  ;;  %v197_v31 = vld [vmem:[%s542_s2 + $0x10] sm:$0xff] }
  0x12   :  { %v175_v6 = vmul.f32 %v388_v19, %v170_v61  ;;  %v176_v9 = vsel %vm55_vm0, %v172_v62, 0.0  ;;  %v84_v10 = vsub.f32 %v80_v56, %v341_v1  ;;  %v85_v11 = vsub.f32 %v81_v57, %v346_v2 }
  0x13   :  { %v86_v12 = vsub.f32 %v82_v58, %v351_v3  ;;  %v177_v13 = vsel %vm55_vm0, %v173_v63, 0.0  ;;  %v179_v15 = vsel %vm55_vm0, %v174_v4, 0.0  ;;  %v87_v17 = vand.u32 2147483647, %v83_v7 }
  0x14   :  { %v181_v16 = vsel %vm55_vm0, %v175_v6, 0.0  ;;  %v178_v18 = vadd.f32 %v177_v13, %v176_v9  ;;  %v88_v20 = vand.u32 2147483647, %v84_v10  ;;  %v89_v21 = vand.u32 2147483647, %v85_v11 }
  0x15   :  { %v90_v22 = vand.u32 2147483647, %v86_v12  ;;  %vm449_vm2 = vcmp.lt.f32.partialorder %v87_v17, 1.0  ;;  %v95_v23 = vmul.f32 0.5, %v83_v7  ;;  %v96_v24 = vmul.f32 0.5, %v84_v10 }
  0x16   :  { %v97_v25 = vmul.f32 0.5, %v85_v11  ;;  %v180_v26 = vadd.f32 %v179_v15, %v178_v18  ;;  %vm453_vm3 = vcmp.lt.f32.partialorder %v88_v20, 1.0  ;;  %vm457_vm4 = vcmp.lt.f32.partialorder %v89_v21, 1.0 }
  0x17   :  { %vm461_vm5 = vcmp.lt.f32.partialorder %v90_v22, 1.0  ;;  %v98_v32 = vmul.f32 0.5, %v86_v12  ;;  %v99_v33 = vmul.f32 %v95_v23, %v83_v7  ;;  %v100_v34 = vmul.f32 %v96_v24, %v84_v10 }
  0x18   :  { %v101_v36 = vmul.f32 %v97_v25, %v85_v11  ;;  %v182_v38 = vadd.f32 %v181_v16, %v180_v26  ;;  %v268_v39 = vadd.f32 -0.5, %v87_v17  ;;  %v269_v40 = vadd.f32 -0.5, %v88_v20 }
  0x19   :  { %v270_v41 = vadd.f32 -0.5, %v89_v21  ;;  %v102_v42 = vmul.f32 %v98_v32, %v86_v12  ;;  %v271_v43 = vadd.f32 -0.5, %v90_v22  ;;  %v200_v44 = vsub.f32 %v196_v30, %v341_v1 }
  0x1a   :  { %v201_v45 = vsub.f32 %v197_v31, %v346_v2  ;;  %183 = vadd.xlane.f32.xlu1 %v182_v38  ;;  %v107_v46 = vsel %vm449_vm2, %v99_v33, %v268_v39  ;;  %v108_v47 = vsel %vm453_vm3, %v100_v34, %v269_v40  ;;  %v202_v49 = vsub.f32 %v198_v37, %v351_v3 }
  0x1b   :  { %v109_v48 = vsel %vm457_vm4, %v101_v36, %v270_v41  ;;  %v110_v50 = vsel %vm461_vm5, %v102_v42, %v271_v43  ;;  %v112_v51 = vmul.f32 %v361_v5, %v107_v46  ;;  %v113_v1 = vmul.f32 %v369_v8, %v108_v47 }
  0x1c   :  { %v114_v2 = vmul.f32 %v381_v14, %v109_v48  ;;  %v115_v52 = vmul.f32 %v388_v19, %v110_v50  ;;  %v203_v53 = vand.u32 2147483647, %v402_v35  ;;  %v204_v54 = vand.u32 2147483647, %v200_v44 }
  0x1d   :  { %v205_v55 = vand.u32 2147483647, %v201_v45  ;;  %v116_v56 = vsel %vm55_vm0, %v112_v51, 0.0  ;;  %v117_v57 = vsel %vm55_vm0, %v113_v1, 0.0  ;;  %v206_v58 = vand.u32 2147483647, %v202_v49 }
  0x1e   :  { %v119_v3 = vsel %vm55_vm0, %v114_v2, 0.0  ;;  %v118_v59 = vadd.f32 %v117_v57, %v116_v56  ;;  %v121_v60 = vsel %vm55_vm0, %v115_v52, 0.0  ;;  %vm494_vm6 = vcmp.lt.f32.partialorder %v203_v53, 1.0 }
  0x1f   :  { %vm498_vm7 = vcmp.lt.f32.partialorder %v204_v54, 1.0  ;;  %vm502_vm8 = vcmp.lt.f32.partialorder %v205_v55, 1.0  ;;  %vm506_vm9 = vcmp.lt.f32.partialorder %v206_v58, 1.0  ;;  %v211_v6 = vmul.f32 0.5, %v402_v35 }
  0x20   :  { %v212_v7 = vmul.f32 0.5, %v200_v44  ;;  %v120_v9 = vadd.f32 %v119_v3, %v118_v59  ;;  %v213_v10 = vmul.f32 0.5, %v201_v45  ;;  %v214_v11 = vmul.f32 0.5, %v202_v49 }
  0x21   :  { %v278_v12 = vadd.f32 -0.5, %v203_v53  ;;  %v215_v13 = vmul.f32 %v211_v6, %v402_v35  ;;  %v279_v16 = vadd.f32 -0.5, %v204_v54  ;;  %v280_v17 = vadd.f32 -0.5, %v205_v55 }
  0x22   :  { %v216_v15 = vmul.f32 %v212_v7, %v200_v44  ;;  %v122_v18 = vadd.f32 %v121_v60, %v120_v9  ;;  %v217_v20 = vmul.f32 %v213_v10, %v201_v45  ;;  %v218_v21 = vmul.f32 %v214_v11, %v202_v49 }
  0x23   :  { %v281_v22 = vadd.f32 -0.5, %v206_v58  ;;  %v223_v0 = vsel %vm494_vm6, %v215_v13, %v278_v12 }
  0x24   :  { %v224_v23 = vsel %vm498_vm7, %v216_v15, %v279_v16  ;;  %123 = vadd.xlane.f32.xlu0 %v122_v18  ;;  %v225_v24 = vsel %vm502_vm8, %v217_v20, %v280_v17  ;;  %v228_v25 = vmul.f32 %v361_v5, %v223_v0 }
  0x25   :  { %v226_v35 = vsel %vm506_vm9, %v218_v21, %v281_v22  ;;  %v229_v26 = vmul.f32 %v369_v8, %v224_v23  ;;  %v230_v27 = vmul.f32 %v381_v14, %v225_v24 }
  0x26   :  { %v231_v28 = vmul.f32 %v388_v19, %v226_v35  ;;  %v232_v29 = vsel %vm55_vm0, %v228_v25, 0.0 }
  0x27   :  { %v233_v30 = vsel %vm55_vm0, %v229_v26, 0.0  ;;  %v235_v32 = vsel %vm55_vm0, %v230_v27, 0.0 }
  0x28   :  { %v234_v31 = vadd.f32 %v233_v30, %v232_v29  ;;  %v237_v33 = vsel %vm55_vm0, %v231_v28, 0.0 }
  0x2a   :  { %v236_v34 = vadd.f32 %v235_v32, %v234_v31 }
  0x2c   :  { %v238_v36 = vadd.f32 %v237_v33, %v236_v34 }
  0x2e   :  { %239 = vadd.xlane.f32.xlu1 %v238_v36 }
  0x9a   :  { %v64_v37 = vpop.xlane.xlu0 %63 }
  0x9b   :  { %v65_v5 = vrot.slane %v64_v37, 4 }
  0x9d   :  { %v66_v38 = vadd.f32 %v65_v5, %v64_v37 }
  0x9f   :  { %v67_v8 = vrot.slane %v66_v38, 2 }
  0xa1   :  { %v68_v39 = vadd.f32 %v67_v8, %v66_v38 }
  0xa3   :  { %v69_v14 = vrot.slane %v68_v39, 1 }
  0xa5   :  { %v70_v40 = vadd.f32 %v69_v14, %v68_v39 }
  0xa7   :  { %v184_v19 = vpop.xlane.xlu1 %183  ;;  %283 = vpush %v70_v40 }
  0xa8   :  { %v185_v41 = vrot.slane %v184_v19, 4 }
  0xaa   :  { %v186_v42 = vadd.f32 %v185_v41, %v184_v19 }
  0xac   :  { %v187_v43 = vrot.slane %v186_v42, 2 }
  0xae   :  { %v188_v46 = vadd.f32 %v187_v43, %v186_v42 }
  0xb0   :  { %v189_v49 = vrot.slane %v188_v46, 1 }
  0xb1   :  { %v124_v44 = vpop.xlane.xlu0 %123 }
  0xb2   :  { %v125_v45 = vrot.slane %v124_v44, 4  ;;  %v190_v52 = vadd.f32 %v189_v49, %v188_v46 }
  0xb4   :  { %v126_v47 = vadd.f32 %v125_v45, %v124_v44 }
  0xb6   :  { %v127_v48 = vrot.slane %v126_v47, 2 }
  0xb8   :  { %v128_v50 = vadd.f32 %v127_v48, %v126_v47 }
  0xba   :  { %v129_v1 = vrot.slane %v128_v50, 1 }
  0xbb   :  { %v240_v51 = vpop.xlane.xlu1 %239 }
  0xbc   :  { %v241_v2 = vrot.slane %v240_v51, 4  ;;  %v130_v53 = vadd.f32 %v129_v1, %v128_v50 }
  0xbe   :  { %v242_v54 = vadd.f32 %v241_v2, %v240_v51  ;;  %285 = vpush %v130_v53 }
  0xbf   :  { %287 = vpush %v190_v52 }
  0xc0   :  { %v243_v55 = vrot.slane %v242_v54, 2 }
  0xc2   :  { %v244_v56 = vadd.f32 %v243_v55, %v242_v54 }
  0xc4   :  { %v245_v57 = vrot.slane %v244_v56, 1 }
  0xc6   :  { %v246_v3 = vadd.f32 %v245_v57, %v244_v56 }
  0xc8   :  { %289 = vpush %v246_v3 }
  0xd8   :  { %s284_s2 = spop %283 }
  0xd9   :  { %74 = sst [smem:[#allocation2]] %s284_s2 }
  0xef   :  { %s286_s18 = spop %285 }
  0xf0   :  { %s288_s19 = spop %287  ;;  %134 = sst [smem:[#allocation2 + $0x1]] %s286_s18 }
  0xf1   :  { %194 = sst [smem:[#allocation2 + $0x2]] %s288_s19 }
  0xf9   :  { %s290_s20 = spop %289 }
  0xfa   :  { %250 = sst [smem:[#allocation2 + $0x3]] %s290_s20 }
  0xfb   :  { %303 = shalt.err (!%p300_p2)
}
  0xfc   :  { %s307_s27 = smov [#allocation2]  }
  0xfd   :  { %258 = dma.smem_to_hbm %s307_s27, 16, %s544_s4, [#allocation3]  }
  0xfe   :  { %304 = dma.done.wait [#allocation3], 16  }
  0xff   :  { %305 = vsyncadd [#allocation3], 4294967280 }
 0x100   :  { %262 = sfence }
 0x101   :  { %263 = vsyncpa [#allocation3], 1 }

</bundles_post_ra>
